<compile_context>
chip_gen: v6e
topology: v6e:2x2x1
jax: 0.10.0
libtpu: 0.0.40
codegen_flags: <defaults>
</compile_context>

<pallas_src>
import math

import jax
import jax.numpy as jnp
from jax.experimental import pallas as pl
from jax.experimental.pallas import tpu as pltpu

LANE = 128  # TPU lane width


def _round_up(x, m):
    return (x + m - 1) // m * m


def a3c_forward_kernel(
    x_ref,
    w1_ref, b1_ref,
    w2_ref, b2_ref,
    w3_ref, b3_ref,
    wh_ref, bh_ref,
    out_ref,
):
    """Whole A3C MLP forward for one batch tile, all matmuls on the MXU.

    Weights may be bf16 (native MXU rate, half weight DMA); the matmul LHS is
    cast to the weight dtype, accumulation is f32, and all bias-add / ReLU
    elementwise math stays f32.
    """
    wdt = w1_ref.dtype
    x = x_ref[...]

    # fc1 + relu
    h = jnp.dot(x.astype(wdt), w1_ref[...], preferred_element_type=jnp.float32)
    h = jnp.maximum(h + b1_ref[...], 0.0)

    # fc2 + relu
    h = jnp.dot(h.astype(wdt), w2_ref[...], preferred_element_type=jnp.float32)
    h = jnp.maximum(h + b2_ref[...], 0.0)

    # fc3 + relu (zero-padded to 128 outputs -> lane-dense intermediate)
    h = jnp.dot(h.astype(wdt), w3_ref[...], preferred_element_type=jnp.float32)
    h = jnp.maximum(h + b3_ref[...], 0.0)

    # fused actor+critic head -> single lane-dense store
    out_ref[...] = (
        jnp.dot(h.astype(wdt), wh_ref[...], preferred_element_type=jnp.float32)
        + bh_ref[...]
    )


def prepare_params(params, input_size, action_size, weights_dtype=jnp.bfloat16):
    """Build kernel-ready params from logical ([in,out] / [1,out]) params.

    - w1 stays [input_size, 256] (no feature padding; x is loaded unpadded)
    - fc3 is zero-padded to 128 outputs (lane-dense intermediates, exact:
      ReLU(0)=0 and the corresponding wh rows are zero)
    - actor/critic heads fused + zero-padded into one [128, head_pad] weight
      with head_pad = round_up(action_size + 1, 128)
    - weights optionally cast to bf16 (biases stay f32)
    """
    head_pad = _round_up(action_size + 1, LANE)

    w3 = jnp.zeros((128, 128), jnp.float32).at[:, :64].set(params["w3"])
    b3 = jnp.zeros((1, 128), jnp.float32).at[:, :64].set(params["b3"])

    wh = jnp.zeros((128, head_pad), jnp.float32)
    wh = wh.at[:64, :action_size].set(params["wa"])
    wh = wh.at[:64, action_size:action_size + 1].set(params["wv"])

    bh = jnp.zeros((1, head_pad), jnp.float32)
    bh = bh.at[:, :action_size].set(params["ba"])
    bh = bh.at[:, action_size:action_size + 1].set(params["bv"])

    return {
        "w1": params["w1"].astype(weights_dtype),
        "b1": params["b1"],
        "w2": params["w2"].astype(weights_dtype),
        "b2": params["b2"],
        "w3": w3.astype(weights_dtype),
        "b3": b3,
        "wh": wh.astype(weights_dtype),
        "bh": bh,
        "input_size": input_size,
        "action_size": action_size,
        "head_pad": head_pad,
    }


def a3c_forward(x, prep, *, block_b=None, small_batch_cutoff=512):
    """Run the A3C forward pass in Pallas.

    x: [B, input_size] float32.
    Returns (action_values [B, action_size], state_value [B]).
    For best fusion of the post-kernel slices, call this inside jax.jit.
    """
    B, in_features = x.shape
    assert in_features == prep["input_size"]
    action_size = prep["action_size"]
    head_pad = prep["head_pad"]

    weight_args = (
        prep["w1"], prep["b1"],
        prep["w2"], prep["b2"],
        prep["w3"], prep["b3"],
        prep["wh"], prep["bh"],
    )

    if B <= small_batch_cutoff:
        # Tiny batch (latency path): single kernel invocation, no grid,
        # everything resident in VMEM as whole arrays.
        vmem = pl.BlockSpec(memory_space=pltpu.MemorySpace.VMEM)
        out = pl.pallas_call(
            a3c_forward_kernel,
            out_shape=jax.ShapeDtypeStruct((B, head_pad), jnp.float32),
            in_specs=[vmem] * (1 + len(weight_args)),
            out_specs=vmem,
        )(x, *weight_args)
    else:
        # Large batch (HBM-bound path): tile over batch with big tiles to
        # amortize per-step overhead, but keep >= 2 grid steps so the
        # "parallel" batch axis can shard across both v7x TensorCores.
        if block_b is None:
            block_b = max(8, min(2048, _round_up(pl.cdiv(B, 2), 8)))
        grid = (pl.cdiv(B, block_b),)  # ragged last tile; no batch padding

        def const_spec(a):
            # Constant block index -> weight/bias VMEM copies stay resident
            # across grid steps (no re-DMA).
            return pl.BlockSpec(a.shape, lambda i, nd=a.ndim: (0,) * nd)

        in_specs = [pl.BlockSpec((block_b, in_features), lambda i: (i, 0))]
        in_specs += [const_spec(a) for a in weight_args]
        out_spec = pl.BlockSpec((block_b, head_pad), lambda i: (i, 0))

        compiler_params = pltpu.CompilerParams(
            dimension_semantics=("parallel",),
            # only needed if a caller forces very large tiles (v5e's default
            # scoped-VMEM limit is 16 MiB); the auto-picked block_b fits.
            vmem_limit_bytes=(64 * 1024 * 1024) if block_b > 2048 else None,
        )

        out = pl.pallas_call(
            a3c_forward_kernel,
            out_shape=jax.ShapeDtypeStruct((B, head_pad), jnp.float32),
            grid=grid,
            in_specs=in_specs,
            out_specs=out_spec,
            compiler_params=compiler_params,
        )(x, *weight_args)

    # Split the fused head outside the kernel; call under jit so these slices
    # fuse with the consumer instead of making an extra HBM pass.
    action_values = out[:, :action_size]
    state_value = out[:, action_size]
    return action_values, state_value


def init_params(key, input_size, action_size):
    """PyTorch-style U(-1/sqrt(fan_in), 1/sqrt(fan_in)) init.

    Weights stored pre-transposed as [in, out]; biases as [1, out].
    """
    sizes = [
        ("1", input_size, 256),
        ("2", 256, 128),
        ("3", 128, 64),
        ("a", 64, action_size),
        ("v", 64, 1),
    ]
    params = {}
    for name, fan_in, fan_out in sizes:
        key, kw, kb = jax.random.split(key, 3)
        bound = 1.0 / math.sqrt(fan_in)
        params[f"w{name}"] = jax.random.uniform(
            kw, (fan_in, fan_out), jnp.float32, -bound, bound
        )
        params[f"b{name}"] = jax.random.uniform(
            kb, (1, fan_out), jnp.float32, -bound, bound
        )
    return params


def reference_forward(x, params):
    """Pure-JAX reference matching the PyTorch semantics (unfused, unpadded)."""
    h = jnp.maximum(x @ params["w1"] + params["b1"], 0.0)
    h = jnp.maximum(h @ params["w2"] + params["b2"], 0.0)
    h = jnp.maximum(h @ params["w3"] + params["b3"], 0.0)
    action = h @ params["wa"] + params["ba"]
    value = (h @ params["wv"] + params["bv"])[:, 0]
    return action, value


if __name__ == "__main__":
    key = jax.random.PRNGKey(0)
    k_param, k_x, k_xb = jax.random.split(key, 3)

    batch = 8
    input_size = 32
    action_size = 8

    params = init_params(k_param, input_size, action_size)
    x = jax.random.normal(k_x, (batch, input_size), jnp.float32)
    ref_action, ref_value = reference_forward(x, params)

    # --- f32 weights, tiny batch (no-grid latency path): strict check ------
    prep_f32 = prepare_params(params, input_size, action_size, jnp.float32)
    action_values, state_value = a3c_forward(x, prep_f32)
    action_values = jax.block_until_ready(action_values)
    state_value = jax.block_until_ready(state_value)
    assert action_values.shape == (batch, action_size)
    assert state_value.shape == (batch,)
    assert jnp.allclose(action_values, ref_action, atol=1e-5, rtol=1e-5)
    assert jnp.allclose(state_value, ref_value, atol=1e-5, rtol=1e-5)

    # --- f32 weights, large ragged batch ("parallel" grid, no batch pad) ---
    big_batch = 2051  # non-multiple of block_b -> exercises the ragged tile
    xb = jax.random.normal(k_xb, (big_batch, input_size), jnp.float32)
    fwd_big = jax.jit(lambda xx: a3c_forward(xx, prep_f32))
    action_b, value_b = fwd_big(xb)
    action_b = jax.block_until_ready(action_b)
    value_b = jax.block_until_ready(value_b)
    ref_ab, ref_vb = reference_forward(xb, params)
    assert action_b.shape == (big_batch, action_size)
    assert value_b.shape == (big_batch,)
    assert jnp.allclose(action_b, ref_ab, atol=1e-4, rtol=1e-4)
    assert jnp.allclose(value_b, ref_vb, atol=1e-4, rtol=1e-4)

    # --- default bf16 weights (native MXU rate), f32 accumulation ----------
    prep_bf16 = prepare_params(params, input_size, action_size)
    action_h, value_h = a3c_forward(x, prep_bf16)
    action_h = jax.block_until_ready(action_h)
    value_h = jax.block_until_ready(value_h)
    assert jnp.allclose(action_h, ref_action, atol=5e-2, rtol=5e-2)
    assert jnp.allclose(value_h, ref_value, atol=5e-2, rtol=5e-2)

    print("KERNEL_OK")
</pallas_src>

<mosaic_0001>
module attributes {stable_mosaic.version = 11 : i64} {
  func.func @a3c_forward_kernel(%arg0: memref<8x32xf32, #tpu.memory_space<vmem>>, %arg1: memref<32x256xf32, #tpu.memory_space<vmem>>, %arg2: memref<1x256xf32, #tpu.memory_space<vmem>>, %arg3: memref<256x128xf32, #tpu.memory_space<vmem>>, %arg4: memref<1x128xf32, #tpu.memory_space<vmem>>, %arg5: memref<128x128xf32, #tpu.memory_space<vmem>>, %arg6: memref<1x128xf32, #tpu.memory_space<vmem>>, %arg7: memref<128x128xf32, #tpu.memory_space<vmem>>, %arg8: memref<1x128xf32, #tpu.memory_space<vmem>>, %arg9: memref<8x128xf32, #tpu.memory_space<vmem>>) attributes {dimension_semantics = [], scalar_prefetch = 0 : i64, scratch_operands = 0 : i64, tpu.core_type = #tpu.core_type<tc>} {
    %c0 = arith.constant 0 : index
    %c0_0 = arith.constant 0 : index
    %0 = vector.load %arg0[%c0, %c0_0] : memref<8x32xf32, #tpu.memory_space<vmem>>, vector<8x32xf32>
    %c0_1 = arith.constant 0 : index
    %c0_2 = arith.constant 0 : index
    %1 = vector.load %arg1[%c0_1, %c0_2] : memref<32x256xf32, #tpu.memory_space<vmem>>, vector<32x256xf32>
    %cst = arith.constant dense<0.000000e+00> : vector<8x256xf32>
    %2 = tpu.matmul %0, %1, %cst {dimension_numbers = #tpu.dot_dimension_numbers<[1], [0], [0], [1], [0, 0, 1, 1], [], []>} : vector<8x32xf32>, vector<32x256xf32>, vector<8x256xf32> -> vector<8x256xf32>
    %c0_3 = arith.constant 0 : index
    %c0_4 = arith.constant 0 : index
    %3 = vector.load %arg2[%c0_3, %c0_4] : memref<1x256xf32, #tpu.memory_space<vmem>>, vector<1x256xf32>
    %4 = vector.broadcast %3 : vector<1x256xf32> to vector<8x256xf32>
    %5 = arith.addf %2, %4 : vector<8x256xf32>
    %cst_5 = arith.constant 0.000000e+00 : f32
    %6 = vector.broadcast %cst_5 : f32 to vector<8x256xf32>
    %7 = arith.maximumf %5, %6 : vector<8x256xf32>
    %c0_6 = arith.constant 0 : index
    %c0_7 = arith.constant 0 : index
    %8 = vector.load %arg3[%c0_6, %c0_7] : memref<256x128xf32, #tpu.memory_space<vmem>>, vector<256x128xf32>
    %cst_8 = arith.constant dense<0.000000e+00> : vector<8x128xf32>
    %9 = tpu.matmul %7, %8, %cst_8 {dimension_numbers = #tpu.dot_dimension_numbers<[1], [0], [0], [1], [0, 0, 1, 1], [], []>} : vector<8x256xf32>, vector<256x128xf32>, vector<8x128xf32> -> vector<8x128xf32>
    %c0_9 = arith.constant 0 : index
    %c0_10 = arith.constant 0 : index
    %10 = vector.load %arg4[%c0_9, %c0_10] : memref<1x128xf32, #tpu.memory_space<vmem>>, vector<1x128xf32>
    %11 = vector.broadcast %10 : vector<1x128xf32> to vector<8x128xf32>
    %12 = arith.addf %9, %11 : vector<8x128xf32>
    %cst_11 = arith.constant 0.000000e+00 : f32
    %13 = vector.broadcast %cst_11 : f32 to vector<8x128xf32>
    %14 = arith.maximumf %12, %13 : vector<8x128xf32>
    %c0_12 = arith.constant 0 : index
    %c0_13 = arith.constant 0 : index
    %15 = vector.load %arg5[%c0_12, %c0_13] : memref<128x128xf32, #tpu.memory_space<vmem>>, vector<128x128xf32>
    %cst_14 = arith.constant dense<0.000000e+00> : vector<8x128xf32>
    %16 = tpu.matmul %14, %15, %cst_14 {dimension_numbers = #tpu.dot_dimension_numbers<[1], [0], [0], [1], [0, 0, 1, 1], [], []>} : vector<8x128xf32>, vector<128x128xf32>, vector<8x128xf32> -> vector<8x128xf32>
    %c0_15 = arith.constant 0 : index
    %c0_16 = arith.constant 0 : index
    %17 = vector.load %arg6[%c0_15, %c0_16] : memref<1x128xf32, #tpu.memory_space<vmem>>, vector<1x128xf32>
    %18 = vector.broadcast %17 : vector<1x128xf32> to vector<8x128xf32>
    %19 = arith.addf %16, %18 : vector<8x128xf32>
    %cst_17 = arith.constant 0.000000e+00 : f32
    %20 = vector.broadcast %cst_17 : f32 to vector<8x128xf32>
    %21 = arith.maximumf %19, %20 : vector<8x128xf32>
    %c0_18 = arith.constant 0 : index
    %c0_19 = arith.constant 0 : index
    %22 = vector.load %arg7[%c0_18, %c0_19] : memref<128x128xf32, #tpu.memory_space<vmem>>, vector<128x128xf32>
    %cst_20 = arith.constant dense<0.000000e+00> : vector<8x128xf32>
    %23 = tpu.matmul %21, %22, %cst_20 {dimension_numbers = #tpu.dot_dimension_numbers<[1], [0], [0], [1], [0, 0, 1, 1], [], []>} : vector<8x128xf32>, vector<128x128xf32>, vector<8x128xf32> -> vector<8x128xf32>
    %c0_21 = arith.constant 0 : index
    %c0_22 = arith.constant 0 : index
    %24 = vector.load %arg8[%c0_21, %c0_22] : memref<1x128xf32, #tpu.memory_space<vmem>>, vector<1x128xf32>
    %25 = vector.broadcast %24 : vector<1x128xf32> to vector<8x128xf32>
    %26 = arith.addf %23, %25 : vector<8x128xf32>
    %c0_23 = arith.constant 0 : index
    %c0_24 = arith.constant 0 : index
    %27 = vector.load %arg9[%c0_23, %c0_24] : memref<8x128xf32, #tpu.memory_space<vmem>>, vector<8x128xf32>
    tpu.vector_store %arg9[%c0_23, %c0_24], %26 {strides = array<i32>} : memref<8x128xf32, #tpu.memory_space<vmem>>, vector<8x128xf32>,
    return
  }
}

</mosaic_0001>

<bundles_post_ra>
// kernel: tpu_custom_call.1
= control target key start
LH: loop header
LB: loop body
LE: loop exit
PB: predicated region body
PF: predicated region fallthrough
CT: control target
= control target key end

     0   :  { %14 = vsyncpa [#allocation3], 0  ;;  %s931_s0 = inlined_call_operand.hbm [shape: f32[8,32], index: 0, kind: input, shape index: {}]   ;;  %s932_s1 = inlined_call_operand.hbm [shape: f32[32,256], index: 1, kind: input, shape index: {}]   ;;  %s933_s2 = inlined_call_operand.vmem [shape: f32[1,256], index: 2, kind: input, shape index: {}]   ;;  %s934_s3 = inlined_call_operand.hbm [shape: f32[256,128], index: 3, kind: input, shape index: {}]   ;;  %s935_s4 = inlined_call_operand.vmem [shape: f32[1,128], index: 4, kind: input, shape index: {}]   ;;  %s936_s5 = inlined_call_operand.hbm [shape: f32[128,128], index: 5, kind: input, shape index: {}]   ;;  %s937_s6 = inlined_call_operand.vmem [shape: f32[1,128], index: 6, kind: input, shape index: {}]   ;;  %s938_s7 = inlined_call_operand.hbm [shape: f32[128,128], index: 7, kind: input, shape index: {}]   ;;  %s939_s8 = inlined_call_operand.vmem [shape: f32[1,128], index: 8, kind: input, shape index: {}]   ;;  %s940_s9 = inlined_call_operand.hbm [shape: f32[8,128], index: 9, kind: output, shape index: {}]  }
   0x1   :  { %15 = vsyncpa [#allocation6], 0 }
   0x2   :  { %16 = vsyncpa [#allocation9], 0 }
   0x3   :  { %17 = vsyncpa [#allocation4], 0  ;;  %s795_s30 = smov [#allocation5]  }
   0x4   :  { %s33_s10 = sshll.u32 %s795_s30, 4  ;;  %s34_s10 = int_to_ptr.vmem [resolvable:$true] %s33_s10 }
   0x5   :  { %s675_s11 = scalar_lea.vmem %s34_s10, 1024  ;;  %p680_p1 = scmp.lt.s32.totalorder %s34_s10, %s34_s10 }
   0x6   :  { %p676_p0 = scmp.ne.s32.totalorder %s34_s10, %s675_s11  ;;  %p681_p2 = scmp.lt.s32.totalorder %s675_s11, %s675_s11 }
   0x8   :  { %p682_p3 = por %p681_p2, %p680_p1 }
   0xa   :  { %p683_p4 = pnand %p682_p3, %p676_p0 }
   0xc   :  { %686 = shalt.err (!%p683_p4)
}
   0xd   :  { %s796_s12 = smov 256   ;;  %s797_s13 = smov 16  }
   0xe   :  { %39 = dma.hbm_to_vmem [thread:$0]  %s932_s1, 1024, %s34_s10, [#allocation6], %s796_s12, %s796_s12, %s797_s13  }
   0xf   :  { %s798_s16 = smov [#allocation8]   ;;  %s799_s18 = smov [#allocation2]  }
  0x10   :  { %s61_s17 = sshll.u32 %s798_s16, 4  ;;  %s24_s19 = sshll.u32 %s799_s18, 4  ;;  %s62_s17 = int_to_ptr.vmem [resolvable:$true] %s61_s17  ;;  %s25_s19 = int_to_ptr.vmem [resolvable:$true] %s24_s19 }
  0x11   :  { %s695_s20 = scalar_lea.vmem %s62_s17, 2048  ;;  %p700_p6 = scmp.lt.s32.totalorder %s62_s17, %s62_s17 }
  0x12   :  { %p696_p5 = scmp.ne.s32.totalorder %s62_s17, %s695_s20  ;;  %p701_p7 = scmp.lt.s32.totalorder %s695_s20, %s695_s20 }
  0x14   :  { %p702_p8 = por %p701_p7, %p700_p6 }
  0x16   :  { %p703_p9 = pnand %p702_p8, %p696_p5 }
  0x18   :  { %706 = shalt.err (!%p703_p9)
}
  0x19   :  { %s800_s21 = smov 128   ;;  %s801_s22 = smov 8  }
  0x1a   :  { %67 = dma.hbm_to_vmem [thread:$0]  %s936_s5, 2048, %s62_s17, [#allocation9], %s800_s21, %s800_s21, %s801_s22  }
  0x1b   :  { %s715_s1 = scalar_lea.vmem %s25_s19, 128  ;;  %p720_p11 = scmp.lt.s32.totalorder %s25_s19, %s25_s19 }
  0x1c   :  { %p716_p10 = scmp.ne.s32.totalorder %s25_s19, %s715_s1  ;;  %p721_p12 = scmp.lt.s32.totalorder %s715_s1, %s715_s1 }
  0x1e   :  { %p722_p13 = por %p721_p12, %p720_p11 }
  0x20   :  { %p723_p0 = pnand %p722_p13, %p716_p10 }
  0x22   :  { %726 = shalt.err (!%p723_p0)
}
  0x23   :  { %27 = dma.hbm_to_vmem [thread:$0]  %s931_s0, 128, %s25_s19, [#allocation3]  }
  0x24   :  { %s802_s27 = smov [#allocation7]   ;;  %s803_s29 = smov [#allocation10]  }
  0x25   :  { %s47_s28 = sshll.u32 %s802_s27, 4  ;;  %s75_s30 = sshll.u32 %s803_s29, 4  ;;  %s48_s28 = int_to_ptr.vmem [resolvable:$true] %s47_s28  ;;  %s76_s30 = int_to_ptr.vmem [resolvable:$true] %s75_s30 }
  0x26   :  { %s735_s10 = scalar_lea.vmem %s48_s28, 4096  ;;  %p740_p2 = scmp.lt.s32.totalorder %s48_s28, %s48_s28 }
  0x27   :  { %p736_p1 = scmp.ne.s32.totalorder %s48_s28, %s735_s10  ;;  %p741_p3 = scmp.lt.s32.totalorder %s735_s10, %s735_s10 }
  0x29   :  { %p742_p4 = por %p741_p3, %p740_p2 }
  0x2b   :  { %p743_p5 = pnand %p742_p4, %p736_p1 }
  0x2d   :  { %746 = shalt.err (!%p743_p5)
}
  0x2e   :  { %53 = dma.hbm_to_vmem [thread:$0]  %s934_s3, 4096, %s48_s28, [#allocation6], %s800_s21, %s800_s21, %s801_s22  }
  0x2f   :  { %s755_s0 = scalar_lea.vmem %s76_s30, 2048  ;;  %p760_p7 = scmp.lt.s32.totalorder %s76_s30, %s76_s30 }
  0x30   :  { %p756_p6 = scmp.ne.s32.totalorder %s76_s30, %s755_s0  ;;  %p761_p8 = scmp.lt.s32.totalorder %s755_s0, %s755_s0 }
  0x32   :  { %p762_p9 = por %p761_p8, %p760_p7 }
  0x34   :  { %p763_p10 = pnand %p762_p9, %p756_p6 }
  0x36   :  { %766 = shalt.err (!%p763_p10)
}
  0x37   :  { %81 = dma.hbm_to_vmem [thread:$0]  %s938_s7, 2048, %s76_s30, [#allocation9], %s800_s21, %s800_s21, %s801_s22  }
  0x38   :  { %787 = dma.done.wait [#allocation3], 128  }
  0x39   :  { %788 = vsyncadd [#allocation3], 4294967168 }
  0x3a   :  { %789 = dma.done.wait [#allocation6], 5120  }
  0x3b   :  { %790 = vsyncadd [#allocation6], 4294962176 }
  0x3c   :  { %791 = dma.done.wait [#allocation9], 4096  }
  0x3d   :  { %792 = vsyncadd [#allocation9], 4294963200  ;;  %v804_v0 = vmov 0.0   ;;  %v107_v1 = vld [vmem:[#allocation5 + $0x38] sm:$0xff]  ;;  %v106_v2 = vld [vmem:[#allocation5 + $0x30] sm:$0xff]  ;;  %vm120_vm0 = vcmask 261120   ;;  %v110_v53 = vlaneseq }
  0x3e   :  { %188 = vmatprep.mubr.f32.mxu0 %v804_v0  ;;  %v105_v3 = vld [vmem:[#allocation5 + $0x28] sm:$0xff]  ;;  %148 = vmatprep.subr.mxu0 %v107_v1  ;;  %v104_v4 = vld [vmem:[#allocation5 + $0x20] sm:$0xff]  ;;  %v103_v5 = vld [vmem:[#allocation5 + $0x18] sm:$0xff]  ;;  %vm805_vm1 = vmmov 0   ;;  %s806_s18 = smov [#allocation11]  }
  0x3f   :  { %149 = vmatpush1.msra.mxu0 %v106_v2  ;;  %v102_v6 = vld [vmem:[#allocation5 + $0x10] sm:$0xff]  ;;  %v228_v7 = vld [vmem:[#allocation7 + $0xf8] sm:$0xff]  ;;  %v101_v10 = vld [vmem:[#allocation5 + $0x8] sm:$0xff]  ;;  %v111_v54 = vshrl.u32 %v110_v53, 7  ;;  %s501_s19 = sshll.u32 %s806_s18, 4  ;;  %s502_s19 = int_to_ptr.vmem [resolvable:$true] %s501_s19 }
  0x40   :  { %150 = vmatprep.subr.mxu0 %v105_v3  ;;  %v212_v8 = vld [vmem:[#allocation7 + $0x78] sm:$0xff]  ;;  %v227_v9 = vld [vmem:[#allocation7 + $0xf0] sm:$0xff]  ;;  %516 = vmatprep.subr.mxu1 %v228_v7  ;;  %v100_v12 = vld [vmem:[#allocation5] sm:$0xff]  ;;  %s767_s20 = scalar_lea.vmem %s502_s19, 128  ;;  %p772_p12 = scmp.lt.s32.totalorder %s502_s19, %s502_s19 }
  0x41   :  { %151 = vmatpush1.msra.mxu0 %v104_v4  ;;  %v211_v11 = vld [vmem:[#allocation7 + $0x70] sm:$0xff]  ;;  %517 = vmatpush3.msra.mxu1 %v212_v8  ;;  %v226_v13 = vld [vmem:[#allocation7 + $0xe8] sm:$0xff]  ;;  %v99_v14 = vld [vmem:[#allocation2] sm:$0xff]  ;;  %v112_v55 = vsub.s32 0, %v111_v54  ;;  %v116_v57 = vsub.s32 1, %v111_v54  ;;  %p768_p11 = scmp.ne.s32.totalorder %s502_s19, %s767_s20  ;;  %p773_p13 = scmp.lt.s32.totalorder %s767_s20, %s767_s20 }
  0x42   :  { %152 = vmatprep.subr.mxu0 %v103_v5  ;;  %518 = vmatprep.subr.mxu1 %v227_v9  ;;  %v210_v15 = vld [vmem:[#allocation7 + $0x68] sm:$0xff]  ;;  %v225_v16 = vld [vmem:[#allocation7 + $0xe0] sm:$0xff]  ;;  %v224_v18 = vld [vmem:[#allocation7 + $0xd8] sm:$0xff] }
  0x43   :  { %153 = vmatpush1.msra.mxu0 %v102_v6  ;;  %519 = vmatpush3.msra.mxu1 %v211_v11  ;;  %v209_v17 = vld [vmem:[#allocation7 + $0x60] sm:$0xff]  ;;  %v208_v19 = vld [vmem:[#allocation7 + $0x58] sm:$0xff]  ;;  %v223_v20 = vld [vmem:[#allocation7 + $0xd0] sm:$0xff]  ;;  %p774_p0 = por %p773_p13, %p772_p12 }
  0x44   :  { %154 = vmatprep.subr.mxu0 %v101_v10  ;;  %520 = vmatprep.subr.mxu1 %v226_v13  ;;  %v207_v21 = vld [vmem:[#allocation7 + $0x50] sm:$0xff]  ;;  %v222_v22 = vld [vmem:[#allocation7 + $0xc8] sm:$0xff]  ;;  %v221_v24 = vld [vmem:[#allocation7 + $0xc0] sm:$0xff] }
  0x45   :  { %155 = vmatpush1.msra.mxu0 %v100_v12  ;;  %521 = vmatpush3.msra.mxu1 %v210_v15  ;;  %v206_v23 = vld [vmem:[#allocation7 + $0x48] sm:$0xff]  ;;  %v205_v25 = vld [vmem:[#allocation7 + $0x40] sm:$0xff]  ;;  %v220_v26 = vld [vmem:[#allocation7 + $0xb8] sm:$0xff]  ;;  %p775_p1 = pnand %p774_p0, %p768_p11 }
  0x46   :  { %512 = vmatmul.mubr.msk.f32.vlgmr.msra.gmra.mxu0 %vm120_vm0, %v99_v14  ;;  %522 = vmatprep.subr.mxu1 %v225_v16  ;;  %v204_v27 = vld [vmem:[#allocation7 + $0x38] sm:$0xff]  ;;  %v219_v28 = vld [vmem:[#allocation7 + $0xb0] sm:$0xff]  ;;  %v218_v30 = vld [vmem:[#allocation7 + $0xa8] sm:$0xff] }
  0x47   :  { %585 = vmatprep.subr.mxu0 %v804_v0  ;;  %523 = vmatpush3.msra.mxu1 %v209_v17  ;;  %v203_v29 = vld [vmem:[#allocation7 + $0x30] sm:$0xff]  ;;  %v202_v31 = vld [vmem:[#allocation7 + $0x28] sm:$0xff]  ;;  %v217_v32 = vld [vmem:[#allocation7 + $0xa0] sm:$0xff] }
  0x48   :  { %524 = vmatprep.subr.mxu1 %v224_v18  ;;  %v201_v33 = vld [vmem:[#allocation7 + $0x20] sm:$0xff]  ;;  %v216_v34 = vld [vmem:[#allocation7 + $0x98] sm:$0xff]  ;;  %v215_v36 = vld [vmem:[#allocation7 + $0x90] sm:$0xff]  ;;  %617 = vmatprep.mubr.msk.f32.mxu0 %vm805_vm1, %v804_v0 }
  0x49   :  { %525 = vmatpush3.msra.mxu1 %v208_v19  ;;  %v200_v35 = vld [vmem:[#allocation7 + $0x18] sm:$0xff]  ;;  %v199_v37 = vld [vmem:[#allocation7 + $0x10] sm:$0xff]  ;;  %v214_v38 = vld [vmem:[#allocation7 + $0x88] sm:$0xff] }
  0x4a   :  { %526 = vmatprep.subr.mxu1 %v223_v20  ;;  %v198_v39 = vld [vmem:[#allocation7 + $0x8] sm:$0xff]  ;;  %v213_v40 = vld [vmem:[#allocation7 + $0x80] sm:$0xff]  ;;  %v322_v42 = vld [vmem:[#allocation8 + $0x78] sm:$0xff] }
  0x4b   :  { %527 = vmatpush3.msra.mxu1 %v207_v21  ;;  %v197_v41 = vld [vmem:[#allocation7] sm:$0xff]  ;;  %v321_v43 = vld [vmem:[#allocation8 + $0x70] sm:$0xff]  ;;  %586 = vmatpush3.msra.mxu0 %v322_v42  ;;  %v320_v44 = vld [vmem:[#allocation8 + $0x68] sm:$0xff] }
  0x4c   :  { %528 = vmatprep.subr.mxu1 %v222_v22  ;;  %587 = vmatprep.subr.mxu0 %v804_v0  ;;  %v319_v45 = vld [vmem:[#allocation8 + $0x60] sm:$0xff]  ;;  %v318_v46 = vld [vmem:[#allocation8 + $0x58] sm:$0xff]  ;;  %v317_v47 = vld [vmem:[#allocation8 + $0x50] sm:$0xff] }
  0x4d   :  { %529 = vmatpush3.msra.mxu1 %v206_v23  ;;  %588 = vmatpush3.msra.mxu0 %v321_v43  ;;  %v316_v48 = vld [vmem:[#allocation8 + $0x48] sm:$0xff]  ;;  %v315_v49 = vld [vmem:[#allocation8 + $0x40] sm:$0xff]  ;;  %v314_v50 = vld [vmem:[#allocation8 + $0x38] sm:$0xff] }
  0x4e   :  { %530 = vmatprep.subr.mxu1 %v221_v24  ;;  %589 = vmatprep.subr.mxu0 %v804_v0  ;;  %v313_v51 = vld [vmem:[#allocation8 + $0x30] sm:$0xff]  ;;  %v312_v52 = vld [vmem:[#allocation8 + $0x28] sm:$0xff]  ;;  %v108_v56 = vld [vmem:[%s933_s2] sm:$0x3] }
  0x4f   :  { %531 = vmatpush3.msra.mxu1 %v205_v25  ;;  %590 = vmatpush3.msra.mxu0 %v320_v44  ;;  %v113_v58 = vrot.slane %v108_v56, %v112_v55  ;;  %v117_v59 = vrot.slane %v108_v56, %v116_v57  ;;  %v311_v3 = vld [vmem:[#allocation8 + $0x20] sm:$0xff]  ;;  %v310_v4 = vld [vmem:[#allocation8 + $0x18] sm:$0xff]  ;;  %v309_v5 = vld [vmem:[#allocation8 + $0x10] sm:$0xff] }
  0x50   :  { %532 = vmatprep.subr.mxu1 %v220_v26  ;;  %591 = vmatprep.subr.mxu0 %v804_v0  ;;  %v308_v6 = vld [vmem:[#allocation8 + $0x8] sm:$0xff]  ;;  %v307_v7 = vld [vmem:[#allocation8] sm:$0xff]  ;;  %v416_v8 = vld [vmem:[#allocation10 + $0x78] sm:$0xff] }
  0x51   :  { %533 = vmatpush3.msra.mxu1 %v204_v27  ;;  %592 = vmatpush3.msra.mxu0 %v319_v45  ;;  %v415_v9 = vld [vmem:[#allocation10 + $0x70] sm:$0xff]  ;;  %v414_v10 = vld [vmem:[#allocation10 + $0x68] sm:$0xff]  ;;  %v413_v11 = vld [vmem:[#allocation10 + $0x60] sm:$0xff] }
  0x52   :  { %534 = vmatprep.subr.mxu1 %v219_v28  ;;  %593 = vmatprep.subr.mxu0 %v804_v0  ;;  %v412_v12 = vld [vmem:[#allocation10 + $0x58] sm:$0xff]  ;;  %v411_v13 = vld [vmem:[#allocation10 + $0x50] sm:$0xff]  ;;  %v410_v14 = vld [vmem:[#allocation10 + $0x48] sm:$0xff] }
  0x53   :  { %535 = vmatpush3.msra.mxu1 %v203_v29  ;;  %594 = vmatpush3.msra.mxu0 %v318_v46  ;;  %v409_v15 = vld [vmem:[#allocation10 + $0x40] sm:$0xff]  ;;  %v408_v16 = vld [vmem:[#allocation10 + $0x38] sm:$0xff]  ;;  %v407_v17 = vld [vmem:[#allocation10 + $0x30] sm:$0xff] }
  0x54   :  { %536 = vmatprep.subr.mxu1 %v218_v30  ;;  %595 = vmatprep.subr.mxu0 %v804_v0  ;;  %v406_v18 = vld [vmem:[#allocation10 + $0x28] sm:$0xff]  ;;  %v405_v19 = vld [vmem:[#allocation10 + $0x20] sm:$0xff]  ;;  %v404_v20 = vld [vmem:[#allocation10 + $0x18] sm:$0xff] }
  0x55   :  { %537 = vmatpush3.msra.mxu1 %v202_v31  ;;  %596 = vmatpush3.msra.mxu0 %v317_v47  ;;  %v513_v22 = vld [vmem:[%s935_s4] ss:$0 sm:$0xff]  ;;  %v403_v27 = vld [vmem:[#allocation10 + $0x10] sm:$0xff]  ;;  %v402_v28 = vld [vmem:[#allocation10 + $0x8] sm:$0xff] }
  0x56   :  { %538 = vmatprep.subr.mxu1 %v217_v32  ;;  %597 = vmatprep.subr.mxu0 %v804_v0  ;;  %v401_v29 = vld [vmem:[#allocation10] sm:$0xff]  ;;  %v514_v30 = vld [vmem:[%s937_s6] ss:$0 sm:$0xff] }
  0x57   :  { %539 = vmatpush3.msra.mxu1 %v201_v33  ;;  %598 = vmatpush3.msra.mxu0 %v316_v48 }
  0x58   :  { %540 = vmatprep.subr.mxu1 %v216_v34  ;;  %599 = vmatprep.subr.mxu0 %v804_v0 }
  0x59   :  { %541 = vmatpush3.msra.mxu1 %v200_v35  ;;  %600 = vmatpush3.msra.mxu0 %v315_v49  ;;  %v515_v35 = vld [vmem:[%s939_s8] ss:$0 sm:$0xff] }
  0x5a   :  { %542 = vmatprep.subr.mxu1 %v215_v36  ;;  %601 = vmatprep.subr.mxu0 %v804_v0 }
  0x5b   :  { %543 = vmatpush3.msra.mxu1 %v199_v37  ;;  %602 = vmatpush3.msra.mxu0 %v314_v50 }
  0x5c   :  { %544 = vmatprep.subr.mxu1 %v214_v38  ;;  %603 = vmatprep.subr.mxu0 %v804_v0 }
  0x5d   :  { %545 = vmatpush3.msra.mxu1 %v198_v39  ;;  %604 = vmatpush3.msra.mxu0 %v313_v51 }
  0x5e   :  { %546 = vmatprep.subr.mxu1 %v213_v40  ;;  %605 = vmatprep.subr.mxu0 %v804_v0 }
  0x5f   :  { %547 = vmatpush3.msra.mxu1 %v197_v41  ;;  %606 = vmatpush3.msra.mxu0 %v312_v52 }
  0x60   :  { %620 = vmatprep.subr.mxu1 %v804_v0  ;;  %607 = vmatprep.subr.mxu0 %v804_v0 }
  0x61   :  { %608 = vmatpush3.msra.mxu0 %v311_v3 }
  0x62   :  { %609 = vmatprep.subr.mxu0 %v804_v0 }
  0x63   :  { %610 = vmatpush3.msra.mxu0 %v310_v4 }
  0x64   :  { %611 = vmatprep.subr.mxu0 %v804_v0 }
  0x65   :  { %612 = vmatpush3.msra.mxu0 %v309_v5 }
  0x66   :  { %613 = vmatprep.subr.mxu0 %v804_v0 }
  0x67   :  { %614 = vmatpush3.msra.mxu0 %v308_v6 }
  0x68   :  { %615 = vmatprep.subr.mxu0 %v804_v0 }
  0x69   :  { %616 = vmatpush3.msra.mxu0 %v307_v7 }
 0x106   :  { %v190_v60 = vpop.f32.mrf.mxu0 }
 0x107   :  { %v191_v61 = vadd.f32 %v190_v60, %v113_v58 }
 0x108   :  { %v192_v62 = vpop.f32.mrf.mxu0 }
 0x109   :  { %v193_v63 = vadd.f32 %v192_v62, %v117_v59  ;;  %v195_v2 = vmax.f32 %v191_v61, 0.0 }
 0x10b   :  { %v196_v1 = vmax.f32 %v193_v63, 0.0 }
 0x10d   :  { %300 = vmatprep.mubr.f32.mxu1 %v196_v1 }
 0x10e   :  { %301 = vmatmul.mubr.f32.vlgmr.msra.gmra.mxu1 %v195_v2 }
 0x10f   :  { %652 = vmatprep.mubr.msk.f32.mxu1 %vm805_vm1, %v804_v0  ;;  %621 = vmatpush3.msra.mxu1 %v416_v8 }
 0x110   :  { %622 = vmatprep.subr.mxu1 %v804_v0 }
 0x111   :  { %623 = vmatpush3.msra.mxu1 %v415_v9 }
 0x112   :  { %624 = vmatprep.subr.mxu1 %v804_v0 }
 0x113   :  { %625 = vmatpush3.msra.mxu1 %v414_v10 }
 0x114   :  { %626 = vmatprep.subr.mxu1 %v804_v0 }
 0x115   :  { %627 = vmatpush3.msra.mxu1 %v413_v11 }
 0x116   :  { %628 = vmatprep.subr.mxu1 %v804_v0 }
 0x117   :  { %629 = vmatpush3.msra.mxu1 %v412_v12 }
 0x118   :  { %630 = vmatprep.subr.mxu1 %v804_v0 }
 0x119   :  { %631 = vmatpush3.msra.mxu1 %v411_v13 }
 0x11a   :  { %632 = vmatprep.subr.mxu1 %v804_v0 }
 0x11b   :  { %633 = vmatpush3.msra.mxu1 %v410_v14 }
 0x11c   :  { %634 = vmatprep.subr.mxu1 %v804_v0 }
 0x11d   :  { %635 = vmatpush3.msra.mxu1 %v409_v15 }
 0x11e   :  { %636 = vmatprep.subr.mxu1 %v804_v0 }
 0x11f   :  { %637 = vmatpush3.msra.mxu1 %v408_v16 }
 0x120   :  { %638 = vmatprep.subr.mxu1 %v804_v0 }
 0x121   :  { %639 = vmatpush3.msra.mxu1 %v407_v17 }
 0x122   :  { %640 = vmatprep.subr.mxu1 %v804_v0 }
 0x123   :  { %641 = vmatpush3.msra.mxu1 %v406_v18 }
 0x124   :  { %642 = vmatprep.subr.mxu1 %v804_v0 }
 0x125   :  { %643 = vmatpush3.msra.mxu1 %v405_v19 }
 0x126   :  { %644 = vmatprep.subr.mxu1 %v804_v0 }
 0x127   :  { %645 = vmatpush3.msra.mxu1 %v404_v20 }
 0x128   :  { %646 = vmatprep.subr.mxu1 %v804_v0 }
 0x129   :  { %647 = vmatpush3.msra.mxu1 %v403_v27 }
 0x12a   :  { %648 = vmatprep.subr.mxu1 %v804_v0 }
 0x12b   :  { %649 = vmatpush3.msra.mxu1 %v402_v28 }
 0x12c   :  { %650 = vmatprep.subr.mxu1 %v804_v0 }
 0x12d   :  { %651 = vmatpush3.msra.mxu1 %v401_v29 }
 0x1ce   :  { %v548_v21 = vpop.f32.mrf.mxu1 }
 0x1d0   :  { %v549_v23 = vpop.f32.mrf.mxu1 }
 0x1d1   :  { %v550_v24 = vadd.f32 %v549_v23, %v548_v21 }
 0x1d3   :  { %v303_v25 = vadd.f32 %v550_v24, %v513_v22 }
 0x1d5   :  { %v306_v26 = vmax.f32 %v303_v25, 0.0 }
 0x1d7   :  { %618 = vmatmul.mubr.f32.vlgmr.msra.gmra.mxu0 %v306_v26 }
 0x297   :  { %v396_v31 = vpop.f32.mrf.mxu0 }
 0x298   :  { %v397_v32 = vadd.f32 %v514_v30, %v396_v31 }
 0x299   :  { %v619_v33 = vpop.f32.mrf.mxu0 }
 0x29a   :  { %v400_v34 = vmax.f32 %v397_v32, 0.0 }
 0x29c   :  { %653 = vmatmul.mubr.f32.vlgmr.msra.gmra.mxu1 %v400_v34 }
 0x35c   :  { %v490_v36 = vpop.f32.mrf.mxu1 }
 0x35d   :  { %v491_v37 = vadd.f32 %v515_v35, %v490_v36 }
 0x35e   :  { %v654_v0 = vpop.f32.mrf.mxu1 }
 0x35f   :  { %494 = vst [vmem:[#allocation11] sm:$0xff] %v491_v37 }
 0x360   :  { %778 = shalt.err (!%p775_p1)
}
 0x361   :  { %504 = dma.vmem_to_hbm [thread:$0]  %s502_s19, 128, %s940_s9, [#allocation4]  }
 0x362   :  { %793 = dma.done.wait [#allocation4], 128  }
 0x363   :  { %794 = vsyncadd [#allocation4], 4294967168 }
 0x364   :  { %508 = vsyncpa [#allocation3], 1 }
 0x365   :  { %509 = vsyncpa [#allocation6], 1 }
 0x366   :  { %510 = vsyncpa [#allocation9], 1 }
 0x367   :  { %511 = vsyncpa [#allocation4], 1 }

</bundles_post_ra>
